<compile_context>
chip_gen: v5e
topology: v5e:2x2
jax: 0.10.0
libtpu: 0.0.40
codegen_flags: <defaults>
</compile_context>

<pallas_src>
import functools

import jax
import jax.numpy as jnp
from jax import lax
from jax.experimental import pallas as pl
from jax.experimental.pallas import tpu as pltpu


def _budgets():
    """Per-generation (data-tile budget, vmem_limit_bytes)."""
    vmem_cap = None
    try:
        info = pltpu.get_tpu_info()
        vmem_cap = getattr(info, "vmem_capacity_bytes", None)
    except Exception:
        vmem_cap = None
    if vmem_cap is None or vmem_cap <= 64 * 1024 * 1024:
        # v7x-class (64 MiB physical VMEM) or unknown: conservative cap.
        return 10 * 1024 * 1024, 44 * 1024 * 1024
    # v5e / v6e (128 MiB physical VMEM): bigger tiles are free.
    return 16 * 1024 * 1024, 64 * 1024 * 1024


def _choose_tiles(B, N, D, itemsize, budget):
    """Pick (tb, tn) so the data tile tb*tn*D*itemsize is about `budget` bytes.

    Layout constraints (the (8,128) rule applies to the last two block dims):
      data block (tb, tn, D): tn % 8 == 0 or tn == N; D taken whole.
      mask block (tb, 1, tn): tn % 128 == 0 or tn == N.
    tb divides B exactly.  tn need NOT divide N: the grid uses pl.cdiv over the
    node axis and the kernel masks the ragged tail in-kernel.
    """
    row_bytes = max(D * itemsize, 1)

    # Node-axis tile: whole axis if it fits (or is small), else a multiple of
    # 512 (satisfies both the %8 data and %128 mask constraints) near budget.
    if N * row_bytes <= budget or N <= 512:
        tn = N
    else:
        tn = max(512, (budget // row_bytes) // 512 * 512)

    # Batch-axis tile: a divisor of B that fills the budget, but always leave
    # >= 2 steps on the parallel batch axis when B >= 2 (v7x megacore).
    cap_b = max(1, budget // max(tn * row_bytes, 1))
    max_tb = B if B < 2 else max(1, B // 2)
    tb = 1
    for t in range(min(max_tb, cap_b), 0, -1):
        if B % t == 0:
            tb = t
            break
    return tb, tn


def _chunk_plan(tn, tb, D, target_bytes=2 * 1024 * 1024, max_chunks=64):
    """Static (start, size) chunks of the node axis for the in-kernel loop.

    Chunk sizes keep the per-chunk f32 intermediate (tb, nc, D) around ~2 MiB
    so the VPU accumulate never materializes a full-tile temporary.
    """
    nc = min(512, max(8, target_bytes // max(tb * D * 4, 1)))
    nc = max(8, (nc // 8) * 8)
    while -(-tn // nc) > max_chunks:   # bound statically-unrolled chunk count
        nc *= 2
    nc = min(nc, tn)
    return tuple((s, min(nc, tn - s)) for s in range(0, tn, nc))


def _masked_mean_kernel(n_total, tn, chunks,
                        data_ref, mask_ref, out_ref, acc_ref, cnt_ref):
    # data_ref: (TB, TN, D) input dtype
    # mask_ref: (TB, 1, TN) bool->int8 / original dtype, node axis lane-dense
    # out_ref : (TB, 1, D)
    # acc_ref : (TB, 1, D) f32 scratch, cnt_ref: (TB, 1, 1) f32 scratch
    k = pl.program_id(1)

    @pl.when(k == 0)
    def _init():
        acc_ref[...] = jnp.zeros_like(acc_ref)
        cnt_ref[...] = jnp.zeros_like(cnt_ref)

    rem = n_total % tn
    base = k * tn
    for start, size in chunks:
        m = mask_ref[:, :, start:start + size].astype(jnp.float32)  # (tb,1,c)
        d = data_ref[:, start:start + size, :]                      # (tb,c,D)
        if rem != 0 and start + size > rem:
            # This chunk can run past the true node count on the last grid
            # step: zero out-of-range mask AND data (garbage / NaN guard).
            lane_ids = base + start + lax.broadcasted_iota(
                jnp.int32, (1, 1, size), 2)
            m = jnp.where(lane_ids < n_total, m, 0.0)
            row_ids = base + start + lax.broadcasted_iota(
                jnp.int32, (1, size, 1), 1)
            d = jnp.where(row_ids < n_total, d, 0)
        cnt_ref[...] += jnp.sum(m, axis=-1, keepdims=True)           # (tb,1,1)
        # VPU multiply + sublane-sum; the lane-dense mask is relaid to column
        # form on the XLU (off the VALU / MXU paths).
        acc_ref[...] += jnp.sum(d * jnp.swapaxes(m, 1, 2),
                                axis=1, keepdims=True)               # (tb,1,D)

    @pl.when(k == pl.num_programs(1) - 1)
    def _finalize():
        inv = pl.reciprocal(jnp.maximum(cnt_ref[...], 1.0), approx=False)
        out_ref[...] = (acc_ref[...] * inv).astype(out_ref.dtype)


def _mean_kernel(n_total, tn, chunks, inv_n, data_ref, out_ref, acc_ref):
    # node_mask=None specialization: direct chunked sum, divide by N.
    k = pl.program_id(1)

    @pl.when(k == 0)
    def _init():
        acc_ref[...] = jnp.zeros_like(acc_ref)

    rem = n_total % tn
    base = k * tn
    for start, size in chunks:
        d = data_ref[:, start:start + size, :]                      # (tb,c,D)
        if rem != 0 and start + size > rem:
            row_ids = base + start + lax.broadcasted_iota(
                jnp.int32, (1, size, 1), 1)
            d = jnp.where(row_ids < n_total, d, 0)
        acc_ref[...] += jnp.sum(d.astype(jnp.float32), axis=1, keepdims=True)

    @pl.when(k == pl.num_programs(1) - 1)
    def _finalize():
        out_ref[...] = (acc_ref[...] * inv_n).astype(out_ref.dtype)


def aggregator_forward(data, node_mask=None, *, tile_budget_bytes=None):
    """Masked mean aggregation over the node axis.

    data:      [B, N, D] float array.
    node_mask: [B, N] (0/1 or bool) or None (treated as all-ones).
    returns:   [B, D]
    """
    B, N, D = data.shape
    itemsize = jnp.dtype(data.dtype).itemsize

    budget, vmem_limit = _budgets()
    if tile_budget_bytes is not None:
        budget = tile_budget_bytes

    tb, tn = _choose_tiles(B, N, D, itemsize, budget)
    chunks = _chunk_plan(tn, tb, D)
    grid = (B // tb, pl.cdiv(N, tn))   # batch (parallel) first, node reduction last

    data_spec = pl.BlockSpec((tb, tn, D), lambda b, k: (b, k, 0))
    out_spec = pl.BlockSpec((tb, 1, D), lambda b, k: (b, 0, 0))  # resident over k
    acc_scratch = pltpu.VMEM((tb, 1, D), jnp.float32)

    compiler_params = pltpu.CompilerParams(
        dimension_semantics=("parallel", "arbitrary"),
        vmem_limit_bytes=vmem_limit,
    )
    out_bytes = B * D * itemsize

    if node_mask is None:
        cost = pl.CostEstimate(flops=B * N * D, transcendentals=0,
                               bytes_accessed=B * N * D * itemsize + out_bytes)
        out = pl.pallas_call(
            functools.partial(_mean_kernel, N, tn, chunks, float(1.0 / N)),
            out_shape=jax.ShapeDtypeStruct((B, 1, D), data.dtype),
            grid_spec=pltpu.PrefetchScalarGridSpec(
                num_scalar_prefetch=0,
                grid=grid,
                in_specs=[data_spec],
                out_specs=out_spec,
                scratch_shapes=[acc_scratch],
            ),
            compiler_params=compiler_params,
            cost_estimate=cost,
        )(data)
    else:
        mask = node_mask
        if mask.dtype == jnp.bool_:
            mask = mask.astype(jnp.int8)   # narrow HBM traffic; f32 cast in-kernel
        mask3 = mask.reshape(B, 1, N)      # lane-dense node axis (contiguous DMA)
        mask_itemsize = jnp.dtype(mask3.dtype).itemsize
        mask_spec = pl.BlockSpec((tb, 1, tn), lambda b, k: (b, 0, k))
        cost = pl.CostEstimate(
            flops=2 * B * N * D, transcendentals=0,
            bytes_accessed=(B * N * D * itemsize + B * N * mask_itemsize
                            + out_bytes))
        out = pl.pallas_call(
            functools.partial(_masked_mean_kernel, N, tn, chunks),
            out_shape=jax.ShapeDtypeStruct((B, 1, D), data.dtype),
            grid_spec=pltpu.PrefetchScalarGridSpec(
                num_scalar_prefetch=0,
                grid=grid,
                in_specs=[data_spec, mask_spec],
                out_specs=out_spec,
                scratch_shapes=[acc_scratch,
                                pltpu.VMEM((tb, 1, 1), jnp.float32)],
            ),
            compiler_params=compiler_params,
            cost_estimate=cost,
        )(data, mask3)

    return out.reshape(B, D)


def _reference(data, node_mask=None):
    if node_mask is None:
        node_mask = jnp.ones(data.shape[:2], dtype=data.dtype)
    m = node_mask.astype(jnp.float32)[..., None]
    s = jnp.sum(data.astype(jnp.float32) * m, axis=1)
    c = jnp.maximum(jnp.sum(m, axis=1), 1.0)
    return (s / c).astype(data.dtype)


if __name__ == "__main__":
    key = jax.random.PRNGKey(0)
    k1, k2, k3, k4 = jax.random.split(key, 4)

    # --- small shapes consistent with the module: batch=2, nodes=8, hidden=32
    B, N, D = 2, 8, 32
    data = jax.random.normal(k1, (B, N, D), dtype=jnp.float32)
    node_mask = (jax.random.uniform(k2, (B, N)) > 0.3).astype(jnp.float32)
    node_mask = node_mask.at[0].set(0.0)      # exercise the max(count, 1) clamp

    out = jax.block_until_ready(aggregator_forward(data, node_mask))
    ref = _reference(data, node_mask)
    assert out.shape == (B, D)
    assert jnp.allclose(out, ref, atol=1e-5, rtol=1e-5), "mismatch vs reference"

    # bool mask (shipped to the kernel as int8, cast in-kernel).
    out_b = jax.block_until_ready(aggregator_forward(data, node_mask > 0.5))
    assert jnp.allclose(out_b, ref, atol=1e-5, rtol=1e-5)

    # node_mask=None specialization (no mask operand at all).
    out_none = jax.block_until_ready(aggregator_forward(data, None))
    assert jnp.allclose(out_none, _reference(data, None), atol=1e-5, rtol=1e-5)

    # --- streamed node-axis reduction: multi-step k grid AND a ragged tail
    #     (N=1000 with tn=512) via a small tile budget.
    B2, N2, D2 = 2, 1000, 128
    data2 = jax.random.normal(k3, (B2, N2, D2), dtype=jnp.float32)
    mask2 = (jax.random.uniform(k4, (B2, N2)) > 0.3).astype(jnp.float32)
    out2 = jax.block_until_ready(
        aggregator_forward(data2, mask2, tile_budget_bytes=256 * 1024))
    assert jnp.allclose(out2, _reference(data2, mask2), atol=1e-4, rtol=1e-4)
    out2n = jax.block_until_ready(
        aggregator_forward(data2, None, tile_budget_bytes=256 * 1024))
    assert jnp.allclose(out2n, _reference(data2, None), atol=1e-4, rtol=1e-4)

    print("KERNEL_OK")
</pallas_src>

<mosaic_0001>
module attributes {stable_mosaic.version = 11 : i64} {
  func.func @_masked_mean_kernel(%arg0: i32, %arg1: i32, %arg2: memref<1x8x32xf32, #tpu.memory_space<vmem>>, %arg3: memref<1x1x8xf32, #tpu.memory_space<vmem>>, %arg4: memref<1x1x32xf32, #tpu.memory_space<vmem>>, %arg5: memref<1x1x32xf32, #tpu.memory_space<vmem>>, %arg6: memref<1x1x1xf32, #tpu.memory_space<vmem>>) attributes {dimension_semantics = [#tpu.dimension_semantics<parallel>, #tpu.dimension_semantics<arbitrary>], iteration_bounds = array<i64: 2, 1>, scalar_prefetch = 0 : i64, scratch_operands = 2 : i64, tpu.core_type = #tpu.core_type<tc>, window_params = [{transform_indices = @transform_0, window_bounds = array<i64: 1, 8, 32>}, {transform_indices = @transform_1, window_bounds = array<i64: 1, 1, 8>}, {transform_indices = @transform_2, window_bounds = array<i64: 1, 1, 32>}]} {
    %c0_i32 = arith.constant 0 : i32
    %0 = arith.cmpi eq, %arg1, %c0_i32 : i32
    %1 = arith.extui %0 : i1 to i32
    %c0_i32_0 = arith.constant 0 : i32
    %2 = arith.cmpi ne, %1, %c0_i32_0 : i32
    scf.if %2 {
      %cst_21 = arith.constant 0.000000e+00 : f32
      %21 = vector.broadcast %cst_21 : f32 to vector<1x1x32xf32>
      %c0_22 = arith.constant 0 : index
      %c0_23 = arith.constant 0 : index
      %c0_24 = arith.constant 0 : index
      %22 = vector.load %arg5[%c0_22, %c0_23, %c0_24] : memref<1x1x32xf32, #tpu.memory_space<vmem>>, vector<1x1x32xf32>
      tpu.vector_store %arg5[%c0_22, %c0_23, %c0_24], %21 {strides = array<i32>} : memref<1x1x32xf32, #tpu.memory_space<vmem>>, vector<1x1x32xf32>,
      %cst_25 = arith.constant 0.000000e+00 : f32
      %23 = vector.broadcast %cst_25 : f32 to vector<1x1x1xf32>
      %c0_26 = arith.constant 0 : index
      %c0_27 = arith.constant 0 : index
      %c0_28 = arith.constant 0 : index
      %24 = vector.load %arg6[%c0_26, %c0_27, %c0_28] : memref<1x1x1xf32, #tpu.memory_space<vmem>>, vector<1x1x1xf32>
      tpu.vector_store %arg6[%c0_26, %c0_27, %c0_28], %23 {strides = array<i32>} : memref<1x1x1xf32, #tpu.memory_space<vmem>>, vector<1x1x1xf32>,
    } else {
    }
    %c0 = arith.constant 0 : index
    %c0_1 = arith.constant 0 : index
    %c0_2 = arith.constant 0 : index
    %3 = vector.load %arg3[%c0, %c0_1, %c0_2] : memref<1x1x8xf32, #tpu.memory_space<vmem>>, vector<1x1x8xf32>
    %c0_3 = arith.constant 0 : index
    %c0_4 = arith.constant 0 : index
    %c0_5 = arith.constant 0 : index
    %4 = vector.load %arg2[%c0_3, %c0_4, %c0_5] : memref<1x8x32xf32, #tpu.memory_space<vmem>>, vector<1x8x32xf32>
    %c0_6 = arith.constant 0 : index
    %c0_7 = arith.constant 0 : index
    %c0_8 = arith.constant 0 : index
    %5 = vector.load %arg6[%c0_6, %c0_7, %c0_8] : memref<1x1x1xf32, #tpu.memory_space<vmem>>, vector<1x1x1xf32>
    %cst = arith.constant dense<0.000000e+00> : vector<1x1xf32>
    %6 = vector.multi_reduction <add>, %3, %cst [2] : vector<1x1x8xf32> to vector<1x1xf32>
    %7 = vector.shape_cast %6 : vector<1x1xf32> to vector<1x1x1xf32>
    %8 = arith.addf %5, %7 : vector<1x1x1xf32>
    %c0_9 = arith.constant 0 : index
    %c0_10 = arith.constant 0 : index
    %c0_11 = arith.constant 0 : index
    %9 = vector.load %arg6[%c0_9, %c0_10, %c0_11] : memref<1x1x1xf32, #tpu.memory_space<vmem>>, vector<1x1x1xf32>
    tpu.vector_store %arg6[%c0_9, %c0_10, %c0_11], %8 {strides = array<i32>} : memref<1x1x1xf32, #tpu.memory_space<vmem>>, vector<1x1x1xf32>,
    %c0_12 = arith.constant 0 : index
    %c0_13 = arith.constant 0 : index
    %c0_14 = arith.constant 0 : index
    %10 = vector.load %arg5[%c0_12, %c0_13, %c0_14] : memref<1x1x32xf32, #tpu.memory_space<vmem>>, vector<1x1x32xf32>
    %11 = tpu.transpose %3, [0, 2, 1] : vector<1x1x8xf32> -> vector<1x8x1xf32>
    %12 = vector.broadcast %11 : vector<1x8x1xf32> to vector<1x8x32xf32>
    %13 = arith.mulf %4, %12 : vector<1x8x32xf32>
    %cst_15 = arith.constant dense<0.000000e+00> : vector<1x32xf32>
    %14 = vector.multi_reduction <add>, %13, %cst_15 [1] : vector<1x8x32xf32> to vector<1x32xf32>
    %15 = vector.shape_cast %14 : vector<1x32xf32> to vector<1x1x32xf32>
    %16 = arith.addf %10, %15 : vector<1x1x32xf32>
    %c0_16 = arith.constant 0 : index
    %c0_17 = arith.constant 0 : index
    %c0_18 = arith.constant 0 : index
    %17 = vector.load %arg5[%c0_16, %c0_17, %c0_18] : memref<1x1x32xf32, #tpu.memory_space<vmem>>, vector<1x1x32xf32>
    tpu.vector_store %arg5[%c0_16, %c0_17, %c0_18], %16 {strides = array<i32>} : memref<1x1x32xf32, #tpu.memory_space<vmem>>, vector<1x1x32xf32>,
    %c0_i32_19 = arith.constant 0 : i32
    %18 = arith.cmpi eq, %arg1, %c0_i32_19 : i32
    %19 = arith.extui %18 : i1 to i32
    %c0_i32_20 = arith.constant 0 : i32
    %20 = arith.cmpi ne, %19, %c0_i32_20 : i32
    scf.if %20 {
      %c0_21 = arith.constant 0 : index
      %c0_22 = arith.constant 0 : index
      %c0_23 = arith.constant 0 : index
      %21 = vector.load %arg6[%c0_21, %c0_22, %c0_23] : memref<1x1x1xf32, #tpu.memory_space<vmem>>, vector<1x1x1xf32>
      %cst_24 = arith.constant 1.000000e+00 : f32
      %22 = vector.broadcast %cst_24 : f32 to vector<1x1x1xf32>
      %23 = arith.maximumf %21, %22 : vector<1x1x1xf32>
      %24 = tpu.reciprocal %23 : vector<1x1x1xf32> -> vector<1x1x1xf32>
      %c0_25 = arith.constant 0 : index
      %c0_26 = arith.constant 0 : index
      %c0_27 = arith.constant 0 : index
      %25 = vector.load %arg5[%c0_25, %c0_26, %c0_27] : memref<1x1x32xf32, #tpu.memory_space<vmem>>, vector<1x1x32xf32>
      %26 = vector.broadcast %24 : vector<1x1x1xf32> to vector<1x1x32xf32>
      %27 = arith.mulf %25, %26 : vector<1x1x32xf32>
      %c0_28 = arith.constant 0 : index
      %c0_29 = arith.constant 0 : index
      %c0_30 = arith.constant 0 : index
      %28 = vector.load %arg4[%c0_28, %c0_29, %c0_30] : memref<1x1x32xf32, #tpu.memory_space<vmem>>, vector<1x1x32xf32>
      tpu.vector_store %arg4[%c0_28, %c0_29, %c0_30], %27 {strides = array<i32>} : memref<1x1x32xf32, #tpu.memory_space<vmem>>, vector<1x1x32xf32>,
    } else {
    }
    return
  }
  func.func @transform_0(%arg0: i32, %arg1: i32) -> (i32, i32, i32) {
    %c0_i32 = arith.constant 0 : i32
    %c0_i32_0 = arith.constant 0 : i32
    return %arg0, %arg1, %c0_i32 : i32, i32, i32
  }
  func.func @transform_1(%arg0: i32, %arg1: i32) -> (i32, i32, i32) {
    %c0_i32 = arith.constant 0 : i32
    %c0_i32_0 = arith.constant 0 : i32
    return %arg0, %c0_i32, %arg1 : i32, i32, i32
  }
  func.func @transform_2(%arg0: i32, %arg1: i32) -> (i32, i32, i32) {
    %c0_i32 = arith.constant 0 : i32
    %c0_i32_0 = arith.constant 0 : i32
    %c0_i32_1 = arith.constant 0 : i32
    return %arg0, %c0_i32, %c0_i32_0 : i32, i32, i32
  }
}

</mosaic_0001>

<bundles_post_ra>
// kernel: tpu_custom_call.1
= control target key start
LH: loop header
LB: loop body
LE: loop exit
PB: predicated region body
PF: predicated region fallthrough
CT: control target
= control target key end

     0   :  { %7 = vsyncpa [#allocation5], 0  ;;  %s802_s0 = inlined_call_operand.hbm [shape: f32[2,8,32], index: 0, kind: input, shape index: {}]   ;;  %s803_s1 = inlined_call_operand.hbm [shape: f32[2,1,8], index: 1, kind: input, shape index: {}]   ;;  %s804_s2 = inlined_call_operand.hbm [shape: f32[2,1,32], index: 2, kind: output, shape index: {}]  }
   0x1   :  { %9 = vsyncpa [#allocation5 + $0x1], 0 }
   0x2   :  { %10 = vsyncpa [#allocation8], 0 }
   0x3   :  { %12 = vsyncpa [#allocation8 + $0x1], 0 }
   0x4   :  { %13 = vsyncpa [#allocation6], 0 }
   0x5   :  { %15 = vsyncpa [#allocation6 + $0x1], 0  ;;  %s665_s9 = smov 0   ;;  %s667_s10 = smov 0  }
   0x6   :  { %s669_s11 = smov 0   ;;  %s671_s12 = smov 0  }
   0x7   :  { %s673_s13 = smov 0   ;;  %s675_s14 = smov 0  }
   0x8 LB: > { %s417_s15 = sadd.s32 4294967295, %s646_s14   ;;  %s418_s16 = sadd.s32 4294967294, %s646_s14   ;;  %s646_s14 = sphi %s675_s14, %s21_s14   ;;  %s642_s13 = sphi %s673_s13, %s813_s13   ;;  %s638_s12 = sphi %s671_s12, %s812_s12   ;;  %s634_s11 = sphi %s669_s11, %s811_s11   ;;  %s630_s10 = sphi %s667_s10, %s810_s10   ;;  %s626_s9 = sphi %s665_s9, %s809_s9  }
   0x9   : > { %s33_s17 = sadd.s32 1, %s642_s13  ;;  %s42_s18 = sadd.s32 1, %s634_s11 }
   0xa   : > { %p35_p0 = scmp.ge.s32.totalorder %s33_s17, 2  ;;  %p49_p1 = scmp.ne.s32.totalorder %s634_s11, %s630_s10 }
   0xb   : > { %p50_p2 = scmp.eq.s32.totalorder %s646_s14, 0  ;;  %p55_p3 = scmp.ne.s32.totalorder %s630_s10, %s626_s9 }
   0xc   : > { %s815_s17 = smov (%p35_p0, %s33_s17), 0  ;;  %p56_p5 = scmp.eq.s32.totalorder %s417_s15, 0 }
   0xd   : > { %p706_p4 = por %p50_p2, %p49_p1  ;;  %s37_s20 = ssub.s32 %s642_s13, %s815_s17 }
   0xe   : > { %p107_p6 = scmp.eq.s32.totalorder %s417_s15, 1  ;;  %p40_p7 = scmp.eq.s32.totalorder %s37_s20, 0 }
   0xf   : > { %p712_p8 = por %p56_p5, %p55_p3  ;;  %p113_p10 = scmp.eq.s32.totalorder %s418_s16, 1 }
  0x10   : > { %p716_p9 = por %p107_p6, %p49_p1  ;;  %p420_p12 = scmp.ge.s32.totalorder %s646_s14, 2 }
  0x11   : > { %s721_s23 = scalar_select %p40_p7, %s634_s11, %s42_s18  }
  0x12   : > { %p723_p11 = por %p113_p10, %p55_p3  ;;  %p444_p13 = scmp.lt.s32.totalorder %s646_s14, 2 }
  0x13   : > { %s133_s25 = sand.u32 1, %s634_s11   ;;  %s422_s27 = sshll.u32 %s642_s13, 3 }
  0x14   : > { %s421_s26 = sshll.u32 %s133_s25, 3  ;;  %s142_s30 = scalar_lea.hbm %s802_s0, %s422_s27 }
  0x15   : > { %s137_s3 = scalar_lea.vmem [#allocation4], %s421_s26  ;;  %s144_s5 = sshll.u32 %s142_s30, 4  ;;  %s145_s5 = int_to_ptr.hbm [resolvable:$true] %s144_s5 }
  0x16   : > { %s146_s4 = sshll.u32 %s137_s3, 4  ;;  %p434_p0 = pnand %p444_p13, %p706_p4  ;;  %s147_s4 = int_to_ptr.vmem [resolvable:$true] %s146_s4 }
  0x17   : > { %p423_p1 = scmp.ge.s32.totalorder %s646_s14, 1  ;;  %p169_p2 = scmp.lt.s32.totalorder %s646_s14, 3 }
  0x18   : > { %s134_s6 = scalar_lea.sflag [#allocation5], %s133_s25  ;;  %s160_s15 = scalar_lea.hbm %s803_s1, %s642_s13 }
  0x19   : > { %436 = dma.hbm_to_vmem [thread:$0]  (!%p434_p0), %s145_s5, 128, %s147_s4, %s134_s6  }
  0x1a   : > { %p170_p3 = pnand %p423_p1, %p169_p2  ;;  %s156_s16 = scalar_lea.vmem [#allocation7], %s133_s25 }
  0x1b   : > { %s164_s18 = sshll.u32 %s156_s16, 4  ;;  %s162_s20 = sshll.u32 %s160_s15, 4  ;;  %s165_s18 = int_to_ptr.vmem [resolvable:$true] %s164_s18  ;;  %s163_s20 = int_to_ptr.hbm [resolvable:$true] %s162_s20 }
  0x1c   : > { %s154_s26 = scalar_lea.sflag [#allocation8], %s133_s25  ;;  %173 = sbr.rel (%p170_p3) target bundleno = 389 (0x185), region = 28 }
  0x1d   : > { %439 = dma.hbm_to_vmem [thread:$0]  (!%p434_p0), %s163_s20, 16, %s165_s18, %s154_s26  }
  0x1e   : > { %s743_s19 = sand.u32 (!%p170_p3), 1, %s630_s10  }
  0x1f   : > { %s424_s27 = sshll.u32 (!%p170_p3), %s743_s19, 3  ;;  %s176_s28 = scalar_lea.sflag (!%p170_p3), [#allocation5], %s743_s19 }
  0x20   : > { %s747_s29 = scalar_lea.vmem (!%p170_p3), [#allocation4], %s424_s27 }
  0x21   : > { %613 = dma.done.wait (%p712_p8), %s176_s28, 128  }
  0x22   : > { %615 = vsyncadd (%p712_p8), %s176_s28, 4294967168  ;;  %s186_s25 = scalar_lea.sflag [#allocation8], %s743_s19  ;;  %s188_s30 = scalar_lea.vmem [#allocation7], %s743_s19 }
  0x23   : > { %617 = dma.done.wait (%p712_p8), %s186_s25, 16  }
  0x24   : > { %619 = vsyncadd (%p712_p8), %s186_s25, 4294967280  ;;  %vm224_vm0 = vcmask 57344   ;;  %v221_v0 = vld [vmem:[%s188_s30] sm:$0x1]  ;;  %vm219_vm1 = vcmask 0   ;;  %v648_v2 = vmov 0.0   ;;  %s318_s4 = scalar_lea.hbm %s804_s2, %s638_s12 }
  0x25   : > { %v225_v1 = vsel %vm224_vm0, %v221_v0, 0.0  ;;  %220 = vst.msk [vmem:[#allocation3] sm:$0x1] %vm219_vm1, %v648_v2  ;;  %v649_v3 = vmov 0   ;;  %vm217_vm2 = vcmask 253952   ;;  %v222_v20 = vld [vmem:[%s747_s29] sm:$0xff] }
  0x26   : > { %226 = vadd.xlane.f32.xlu0 %v225_v1  ;;  %496 = vset.pattern.permute.xlu1 %v649_v3  ;;  %218 = vst.msk [vmem:[#allocation2] sm:$0x1] %vm217_vm2, %v648_v2  ;;  %vm270_vm7 = vcmask 261120   ;;  %s212_s5 = scalar_lea.vmem [#allocation9], %s743_s19  ;;  %s322_s7 = sshll.u32 %s318_s4, 4  ;;  %s323_s7 = int_to_ptr.hbm [resolvable:$true] %s322_s7 }
  0x27   : > { %s320_s6 = sshll.u32 %s212_s5, 4  ;;  %s310_s8 = scalar_lea.sflag [#allocation6], %s743_s19  ;;  %s321_s6 = int_to_ptr.vmem [resolvable:$true] %s320_s6 }
  0x28   : > { %s574_s15 = sshra.s32 %s323_s7, 4  ;;  %s580_s20 = scalar_lea.hbm %s804_s2, 2  ;;  %s575_s15 = int_to_ptr.hbm [resolvable:$true] %s574_s15 }
  0x29   : > { %s576_s16 = scalar_lea.hbm %s575_s15, 1  ;;  %p581_p7 = scmp.lt.s32.totalorder %s575_s15, %s804_s2 }
  0x2a   : > { %p577_p4 = scmp.ne.s32.totalorder %s575_s15, %s576_s16  ;;  %p582_p8 = scmp.lt.s32.totalorder %s580_s20, %s576_s16 }
  0x2c   : > { %v223_v4 = vld [vmem:[#allocation3] sm:$0x1]  ;;  %p578_p5 = pnand %p577_p4, %p716_p9  ;;  %p583_p10 = por %p582_p8, %p581_p7 }
  0x2d   : > { %v231_v29 = vld [vmem:[#allocation2] sm:$0x1] }
  0x2e   : > { %p579_p6 = pneg %p578_p5 }
  0x30   : > { %p584_p13 = pnand %p583_p10, %p579_p6 }
  0x4f   : > { %232 = vxpose.xlu0.b32.start.end [1/1] (short) (narrow) %v221_v0, 8 }
  0x99   : > { %v227_v5 = vpop.xlane.xlu0 %226 }
  0x9a   : > { %v228_v6 = vadd.f32 %v227_v5, %v223_v4 }
  0x9c   : > { %230 = vst.msk [vmem:[#allocation3] sm:$0x1] %vm219_vm1, %v228_v6 }
  0xa3   : > { %v284_v7 = vld [vmem:[#allocation3] sm:$0x1] }
  0xa4   : > { %v285_v8 = vmax.f32 %v284_v7, 1.0 }
  0xa6   : > { %498 = vrcp.f32 %v285_v8  ;;  %v297_v15 = vand.u32 2147483648, %v285_v8  ;;  %vm291_vm4 = vweird.f32 %v285_v8  ;;  %v295_v16 = vand.u32 2147483647, %v285_v8 }
  0xa8   : > { %v298_v18 = vor.u32 1.1754944e-38, %v297_v15  ;;  %vm296_vm6 = vcmp.eq.f32.partialorder %v295_v16, 8.507059e+37 }
  0xac   : > { %v499_v9 = vpop.eup %498 }
  0xad   : > { %v287_v10 = vmul.f32 %v499_v9, %v285_v8  ;;  %vm292_vm3 = vweird.f32 %v499_v9 }
  0xae   : > { %vm293_vm5 = vmor %vm291_vm4, %vm292_vm3 }
  0xaf   : > { %v288_v11 = vsub.f32 1.0, %v287_v10 }
  0xb1   : > { %v289_v12 = vmul.f32 %v499_v9, %v288_v11 }
  0xb3   : > { %v290_v14 = vadd.f32 %v499_v9, %v289_v12 }
  0xb5   : > { %v294_v17 = vsel %vm293_vm5, %v499_v9, %v290_v14 }
  0xb6   : > { %497 = vset.pattern.permute.xlu0 %v649_v3  ;;  %v299_v19 = vsel %vm296_vm6, %v298_v18, %v294_v17 }
  0xf3   : > { %v248_v13 = vpop.trf.xlu0 }
  0xf4   : > { %266 = vperm.xlu1 %496, %v248_v13  }
  0xfc   : > { %303 = vperm.xlu1 %496, %v299_v19  }
 0x166   : > { %v267_v21 = vpop.permute.xlu1 %266 }
 0x167   : > { %v269_v22 = vmul.f32 %v267_v21, %v222_v20 }
 0x169   : > { %v271_v23 = vsel %vm270_vm7, %v269_v22, 0.0 }
 0x16a   : > { %v272_v24 = vrot.slane %v271_v23, 4 }
 0x16c   : > { %v273_v25 = vadd.f32 %v272_v24, %v271_v23 }
 0x16e   : > { %v274_v26 = vrot.slane %v273_v25, 2  ;;  %v304_v32 = vpop.permute.xlu1 %303 }
 0x16f   : > { %v306_v33 = vperm.slane %v304_v32, 0 }
 0x170   : > { %v275_v27 = vadd.f32 %v274_v26, %v273_v25 }
 0x172   : > { %v276_v28 = vrot.slane %v275_v27, 1 }
 0x174   : > { %v277_v30 = vadd.f32 %v276_v28, %v275_v27 }
 0x176   : > { %v278_v31 = vadd.f32 %v277_v30, %v231_v29 }
 0x178   : > { %280 = vst.msk [vmem:[#allocation2] sm:$0x1] %vm217_vm2, %v278_v31 }
 0x17f   : > { %v300_v34 = vld [vmem:[#allocation2] sm:$0x1] }
 0x180   : > { %v307_v35 = vmul.f32 %v306_v33, %v300_v34 }
 0x182   : > { %308 = vst.msk [vmem:[%s212_s5] sm:$0x1] %vm217_vm2, %v307_v35 }
 0x183   : > { %587 = shalt.err (!%p584_p13)
}
 0x184   : > { %431 = dma.vmem_to_hbm [thread:$0]  (%p716_p9), %s321_s6, 16, %s323_s7, %s310_s8  }
 0x185 PF: > { %s334_s19 = sand.u32 1, %s626_s9   ;;  %p441_p0 = pnand %p420_p12, %p723_p11 }
 0x186   : > { %s335_s28 = scalar_lea.sflag [#allocation6], %s334_s19 }
 0x187   : > { %p442_p1 = pneg %p441_p0 }
 0x189   : > { %621 = dma.done.wait (%p442_p1), %s335_s28, 16  }
 0x18a   : > { %623 = vsyncadd (%p442_p1), %s335_s28, 4294967280  ;;  %s21_s14 = sadd.s32 1, %s646_s14   ;;  %s809_s9 = smov %s630_s10 }
 0x18b   : > { %p18_p2 = scmp.ge.s32.totalorder %s21_s14, 4   ;;  %s810_s10 = smov %s634_s11 }
 0x18c   : > { %s811_s11 = smov %s721_s23  ;;  %s812_s12 = smov %s642_s13 }
 0x18d   : > { %s813_s13 = smov %s815_s17  ;;  %20 = sbr.rel (!%p18_p2) target bundleno = 8 (0x8), region = 94 }
 0x192   :  { %340 = vsyncpa [#allocation5], 1 }
 0x193   :  { %342 = vsyncpa [#allocation5 + $0x1], 1 }
 0x194   :  { %343 = vsyncpa [#allocation8], 1 }
 0x195   :  { %345 = vsyncpa [#allocation8 + $0x1], 1 }
 0x196   :  { %346 = vsyncpa [#allocation6], 1 }
 0x197   :  { %348 = vsyncpa [#allocation6 + $0x1], 1 }

</bundles_post_ra>
